<compile_context>
chip_gen: v6e
topology: v6e:2x2x1
jax: 0.10.0
libtpu: 0.0.40
codegen_flags: <defaults>
</compile_context>

<pallas_src>
import jax
import jax.numpy as jnp
from jax.experimental import pallas as pl
from jax.experimental.pallas import tpu as pltpu

LANES = 128
TARGET_BLOCK_BYTES = 4 << 20   # ~4 MiB per pipelined block (amortizes ~0.35us/step)
SMALL_BYTES = 512 << 10        # <= 512 KiB: single unpipelined whole-array block
VMEM_LIMIT_BYTES = 32 << 20    # 2x(in) + 2x(out) 4 MiB buffers + headroom


def _sublanes_for(dtype):
    # Native sublane packing: 8 rows for 32-bit, 16 for 16-bit, 32 for 8-bit.
    itemsize = jnp.dtype(dtype).itemsize
    return max(8, 32 // max(1, itemsize))


# ---------------------------------------------------------------------------
# Primary path: zero-data-movement identity (output aliases input).
# ---------------------------------------------------------------------------
def _identity_alias_kernel(x_ref, o_ref):
    # Output aliases input (input_output_aliases={0: 0}) and both refs stay in
    # HBM (memory_space=pl.ANY): the data is already where it must be, so the
    # kernel intentionally moves nothing.
    del x_ref, o_ref


def _identity_alias(x):
    return pl.pallas_call(
        _identity_alias_kernel,
        out_shape=jax.ShapeDtypeStruct(x.shape, x.dtype),
        in_specs=[pl.BlockSpec(memory_space=pl.ANY)],
        out_specs=pl.BlockSpec(memory_space=pl.ANY),
        input_output_aliases={0: 0},
    )(x)


# ---------------------------------------------------------------------------
# Optional path: materialize a fresh copy (tiled, pipelined, lane-dense).
# ---------------------------------------------------------------------------
def _copy_kernel(x_ref, o_ref):
    o_ref[...] = x_ref[...]


def _identity_copy(x):
    total = x.size
    itemsize = jnp.dtype(x.dtype).itemsize
    nbytes = total * itemsize

    # Small inputs: one whole-array block, no grid, no reshape, no padding.
    if nbytes <= SMALL_BYTES:
        return pl.pallas_call(
            _copy_kernel,
            out_shape=jax.ShapeDtypeStruct(x.shape, x.dtype),
        )(x)

    sub = _sublanes_for(x.dtype)
    flat = x.reshape(total)

    pad = (-total) % LANES
    if pad:
        # TODO(synk): rare large-and-unaligned case still pays one pad and one
        # trailing-slice pass; lane-aligned sizes (the common case) avoid both.
        flat = jnp.pad(flat, (0, pad))
    rows = (total + pad) // LANES
    x2 = flat.reshape(rows, LANES)

    # Bytes-based, dtype-aware tile (~4 MiB), rounded to the native sublane
    # multiple.  Ragged last block is handled by Pallas (masked stores).
    tile_rows = max(sub, (TARGET_BLOCK_BYTES // (LANES * itemsize)) // sub * sub)
    if tile_rows >= rows:
        tile_rows = rows  # single block; full-extent dim is always legal
    grid = (pl.cdiv(rows, tile_rows),)

    out2 = pl.pallas_call(
        _copy_kernel,
        out_shape=jax.ShapeDtypeStruct((rows, LANES), x.dtype),
        grid=grid,
        in_specs=[pl.BlockSpec((tile_rows, LANES), lambda i: (i, 0))],
        out_specs=pl.BlockSpec((tile_rows, LANES), lambda i: (i, 0)),
        compiler_params=pltpu.CompilerParams(
            dimension_semantics=("parallel",),
            vmem_limit_bytes=VMEM_LIMIT_BYTES,
        ),
    )(x2)

    out_flat = out2.reshape(rows * LANES)
    if pad:
        out_flat = out_flat[:total]
    return out_flat.reshape(x.shape)


def identity_forward(x, *, materialize_copy=False):
    """Pallas TPU implementation of nn.Identity().forward(x) -> x."""
    x = jnp.asarray(x)
    if x.size == 0 or x.ndim == 0:
        return x  # nothing for a kernel to do
    if materialize_copy:
        return _identity_copy(x)
    return _identity_alias(x)


if __name__ == "__main__":
    key = jax.random.PRNGKey(0)
    x = jax.random.normal(key, (2, 4, 16, 16), jnp.float32)

    # Primary (zero-data-movement) path.
    y = jax.block_until_ready(jax.jit(identity_forward)(x))
    assert y.shape == x.shape, (y.shape, x.shape)
    assert y.dtype == x.dtype, (y.dtype, x.dtype)
    assert bool(jnp.all(y == x)), "Identity output must be bit-exact"

    # Materializing-copy path: small odd shape (single-block fast path) and a
    # larger lane-aligned shape (4 MiB tiles, ragged last block, parallel grid).
    fwd_copy = jax.jit(lambda t: identity_forward(t, materialize_copy=True))
    for shape in [(3, 5, 7), (5, 1000, 1024)]:
        xi = jax.random.normal(jax.random.PRNGKey(1), shape, jnp.float32)
        yi = jax.block_until_ready(fwd_copy(xi))
        assert yi.shape == xi.shape and yi.dtype == xi.dtype
        assert bool(jnp.all(yi == xi)), f"copy path mismatch for {shape}"

    print("KERNEL_OK")
</pallas_src>

<mosaic_0001>
module attributes {stable_mosaic.version = 11 : i64} {
  func.func @_identity_alias_kernel(%arg0: memref<2x4x16x16xf32, #tpu.memory_space<any>>, %arg1: memref<2x4x16x16xf32, #tpu.memory_space<any>>) attributes {dimension_semantics = [], scalar_prefetch = 0 : i64, scratch_operands = 0 : i64, tpu.core_type = #tpu.core_type<tc>} {
    return
  }
}

</mosaic_0001>

<bundles_post_ra>
// kernel: identity_forward.1
= control target key start
LH: loop header
LB: loop body
LE: loop exit
PB: predicated region body
PF: predicated region fallthrough
CT: control target
= control target key end

     0   :  { %s16_s0 = inlined_call_operand.hbm [shape: f32[2,4,16,16], index: 0, kind: input, shape index: {}, may-alias: {0,1}]   ;;  %s17_s1 = inlined_call_operand.hbm [shape: f32[2,4,16,16], index: 1, kind: output, shape index: {}, may-alias: {0,1}]  }

</bundles_post_ra>
